<compile_context>
chip_gen: v5e
topology: v5e:2x2
jax: 0.10.0
libtpu: 0.0.40
codegen_flags: <defaults>
</compile_context>

<pallas_src>
import jax
import jax.numpy as jnp
from jax.experimental import pallas as pl
from jax.experimental.pallas import tpu as pltpu


def _linear_kernel(x_ref, w_ref, o_ref):
    # One (tm, K) x (K, n_pad) tile matmul on the MXU, f32 accumulation.
    o_ref[...] = jnp.dot(
        x_ref[...], w_ref[...], preferred_element_type=jnp.float32
    ).astype(o_ref.dtype)


def _round_up(x, m):
    return ((x + m - 1) // m) * m


def mlp_out_ort_forward(x, w, *, tm=None, use_pallas=None):
    """h1 = x @ w (no bias). x: [B, D_in], w: [D_in, D_out] (orthonormal columns)."""
    B, D_in = x.shape
    D_in_w, D_out = w.shape
    assert D_in == D_in_w, "shape mismatch between x and w"

    # Small-shape fast path: pallas_call launch + pad/slice overhead dominates
    # tiny matmuls; a bare jnp.dot is strictly faster there.
    if use_pallas is None:
        use_pallas = (2 * B * D_in * D_out) >= (1 << 22)
    if not use_pallas:
        return jnp.dot(x, w, preferred_element_type=jnp.float32).astype(x.dtype)

    # Lane-dense N: pad D_out with zero columns to a multiple of 128 (weight only;
    # it is tiny, and the pad columns are sliced off after the call).
    n_pad = _round_up(D_out, 128)
    w_p = w if n_pad == D_out else jnp.pad(w, ((0, 0), (0, n_pad - D_out)))

    # M tile: stream big row blocks (HBM-bound kernel, K is small), capped at 512.
    if tm is None:
        tm = min(512, max(8, _round_up(B, 8)))
        # v7x has 2 TensorCores; make sure a moderately sized batch yields >= 2
        # parallel M blocks so both cores get work (v5e/v6e unaffected).
        if B > 16 and pl.cdiv(B, tm) < 2:
            tm = max(8, _round_up(pl.cdiv(B, 2), 8))
    grid_m = pl.cdiv(B, tm)

    itemsize = jnp.dtype(x.dtype).itemsize
    # Double-buffered x + resident (still possibly double-buffered) w + double-
    # buffered output tile; 2x headroom, clamped to [32 MiB, 64 MiB] so the limit
    # is valid on every generation (v7x has only 64 MiB physical VMEM per TC).
    need = (2 * tm * D_in + 2 * D_in * n_pad + 2 * tm * n_pad) * itemsize
    vmem_limit = int(min(64 * 1024 * 1024, max(2 * need, 32 * 1024 * 1024)))

    # TODO(synk): for very large D_in (general ORTHFC shapes) add a K grid axis
    # marked "arbitrary" with an f32 VMEM accumulator instead of whole-K blocks.

    out_padded = pl.pallas_call(
        _linear_kernel,
        out_shape=jax.ShapeDtypeStruct((B, n_pad), x.dtype),
        grid_spec=pl.GridSpec(
            grid=(grid_m,),
            in_specs=[
                pl.BlockSpec((tm, D_in), lambda i: (i, 0)),      # streamed rows of x
                pl.BlockSpec((D_in, n_pad), lambda i: (0, 0)),   # weight: VMEM-resident
            ],
            out_specs=pl.BlockSpec((tm, n_pad), lambda i: (i, 0)),
        ),
        compiler_params=pltpu.CompilerParams(
            dimension_semantics=("parallel",),
            vmem_limit_bytes=vmem_limit,
        ),
        cost_estimate=pl.CostEstimate(
            flops=2 * B * D_in * n_pad,
            transcendentals=0,
            bytes_accessed=(B * D_in + D_in * n_pad + B * n_pad) * itemsize,
        ),
    )(x, w_p)

    return out_padded[:, :D_out]


def make_orthogonal_weight(key, d_in, d_out, dtype=jnp.float32):
    """Deterministic orthogonal weight (orthonormal columns), emulating
    geotorch.orthogonal. Requires d_in >= d_out (the newLinear branch of ORTHFC)."""
    assert d_in >= d_out, "ORTHFC newLinear branch requires dimin >= dimout"
    a = jax.random.normal(key, (d_in, d_out), dtype=jnp.float32)
    q, r = jnp.linalg.qr(a)
    # Fix signs for determinism; avoid sign(0)==0 zeroing a column.
    d = jnp.diagonal(r)
    q = q * jnp.where(d >= 0, 1.0, -1.0)[None, :]
    return q.astype(dtype)


if __name__ == "__main__":
    # Small shapes consistent with the module: batch=8, input_dim=64, output_dim=32.
    B, D_IN, D_OUT = 8, 64, 32

    key = jax.random.PRNGKey(0)
    kx, kw = jax.random.split(key)

    x = jax.random.normal(kx, (B, D_IN), dtype=jnp.float32)
    w = make_orthogonal_weight(kw, D_IN, D_OUT, dtype=jnp.float32)

    ref = x @ w

    # Exercise the Pallas kernel explicitly (the auto heuristic would route this
    # toy size to the jnp.dot fast path).
    out = mlp_out_ort_forward(x, w, use_pallas=True)
    out = jax.block_until_ready(out)
    assert out.shape == (B, D_OUT)
    assert jnp.allclose(out, ref, atol=1e-4, rtol=1e-4)

    # Also check the auto-dispatch (fast) path.
    out_fast = jax.block_until_ready(mlp_out_ort_forward(x, w))
    assert jnp.allclose(out_fast, ref, atol=1e-4, rtol=1e-4)

    print("KERNEL_OK")
</pallas_src>

<mosaic_0001>
module attributes {stable_mosaic.version = 11 : i64} {
  func.func @_linear_kernel(%arg0: i32, %arg1: memref<8x64xf32, #tpu.memory_space<vmem>>, %arg2: memref<64x128xf32, #tpu.memory_space<vmem>>, %arg3: memref<8x128xf32, #tpu.memory_space<vmem>>) attributes {dimension_semantics = [#tpu.dimension_semantics<parallel>], iteration_bounds = array<i64: 1>, scalar_prefetch = 0 : i64, scratch_operands = 0 : i64, tpu.core_type = #tpu.core_type<tc>, window_params = [{transform_indices = @transform_0, window_bounds = array<i64: 8, 64>}, {pipeline_mode = #tpu.pipeline_mode<synchronous>, transform_indices = @transform_1, window_bounds = array<i64: 64, 128>}, {transform_indices = @transform_2, window_bounds = array<i64: 8, 128>}]} {
    %c0 = arith.constant 0 : index
    %c0_0 = arith.constant 0 : index
    %0 = vector.load %arg1[%c0, %c0_0] : memref<8x64xf32, #tpu.memory_space<vmem>>, vector<8x64xf32>
    %c0_1 = arith.constant 0 : index
    %c0_2 = arith.constant 0 : index
    %1 = vector.load %arg2[%c0_1, %c0_2] : memref<64x128xf32, #tpu.memory_space<vmem>>, vector<64x128xf32>
    %cst = arith.constant dense<0.000000e+00> : vector<8x128xf32>
    %2 = tpu.matmul %0, %1, %cst {dimension_numbers = #tpu.dot_dimension_numbers<[1], [0], [0], [1], [0, 0, 1, 1], [], []>} : vector<8x64xf32>, vector<64x128xf32>, vector<8x128xf32> -> vector<8x128xf32>
    %c0_3 = arith.constant 0 : index
    %c0_4 = arith.constant 0 : index
    %3 = vector.load %arg3[%c0_3, %c0_4] : memref<8x128xf32, #tpu.memory_space<vmem>>, vector<8x128xf32>
    tpu.vector_store %arg3[%c0_3, %c0_4], %2 {strides = array<i32>} : memref<8x128xf32, #tpu.memory_space<vmem>>, vector<8x128xf32>,
    return
  }
  func.func @transform_0(%arg0: i32) -> (i32, i32) {
    %c0_i32 = arith.constant 0 : i32
    %c0_i32_0 = arith.constant 0 : i32
    return %arg0, %c0_i32 : i32, i32
  }
  func.func @transform_1(%arg0: i32) -> (i32, i32) {
    %c0_i32 = arith.constant 0 : i32
    %c0_i32_0 = arith.constant 0 : i32
    %c0_i32_1 = arith.constant 0 : i32
    return %c0_i32, %c0_i32_0 : i32, i32
  }
  func.func @transform_2(%arg0: i32) -> (i32, i32) {
    %c0_i32 = arith.constant 0 : i32
    %c0_i32_0 = arith.constant 0 : i32
    return %arg0, %c0_i32 : i32, i32
  }
}

</mosaic_0001>

<bundles_post_ra>
// kernel: tpu_custom_call.1
= control target key start
LH: loop header
LB: loop body
LE: loop exit
PB: predicated region body
PF: predicated region fallthrough
CT: control target
= control target key end

     0   :  { %7 = vsyncpa [#allocation3], 0  ;;  %s207_s0 = inlined_call_operand.hbm [shape: f32[8,64], index: 0, kind: input, shape index: {}]   ;;  %s208_s1 = inlined_call_operand.hbm [shape: f32[64,128], index: 1, kind: input, shape index: {}]   ;;  %s209_s2 = inlined_call_operand.hbm [shape: f32[8,128], index: 2, kind: output, shape index: {}]  }
   0x1   :  { %8 = vsyncpa [#allocation6], 0 }
   0x2   :  { %9 = vsyncpa [#allocation4], 0  ;;  %s15_s11 = sshll.u32 %s207_s0, 4  ;;  %s178_s12 = smov [#allocation2]   ;;  %s16_s11 = int_to_ptr.hbm [resolvable:$true] %s15_s11 }
   0x3   :  { %s17_s13 = sshll.u32 %s178_s12, 4  ;;  %s25_s16 = sshll.u32 %s208_s1, 4  ;;  %s18_s13 = int_to_ptr.vmem [resolvable:$true] %s17_s13  ;;  %s26_s16 = int_to_ptr.hbm [resolvable:$true] %s25_s16 }
   0x4   :  { %20 = dma.hbm_to_vmem [thread:$0]  %s16_s11, 128, %s18_s13, [#allocation3]  }
   0x5   :  { %s179_s17 = smov [#allocation5]   ;;  %s180_s19 = smov 128  }
   0x6   :  { %s27_s18 = sshll.u32 %s179_s17, 4  ;;  %s181_s20 = smov 8   ;;  %s28_s18 = int_to_ptr.vmem [resolvable:$true] %s27_s18 }
   0x7   :  { %33 = dma.hbm_to_vmem [thread:$0]  %s26_s16, 1024, %s28_s18, [#allocation6], %s180_s19, %s180_s19, %s181_s20  }
   0x8   :  { %172 = dma.done.wait [#allocation3], 128  }
   0x9   :  { %173 = vsyncadd [#allocation3], 4294967168 }
   0xa   :  { %174 = dma.done.wait [#allocation6], 1024  }
   0xb   :  { %175 = vsyncadd [#allocation6], 4294966272  ;;  %v50_v0 = vld [vmem:[#allocation5 + $0x38] sm:$0xff]  ;;  %v49_v1 = vld [vmem:[#allocation5 + $0x30] sm:$0xff]  ;;  %vm51_vm0 = vcmask 523264   ;;  %s182_s0 = smov [#allocation7]  }
   0xc   :  { %63 = vmatpush.msra.mxu0 %v50_v0  ;;  %v48_v2 = vld [vmem:[#allocation5 + $0x28] sm:$0xff]  ;;  %v47_v3 = vld [vmem:[#allocation5 + $0x20] sm:$0xff]  ;;  %v46_v4 = vld [vmem:[#allocation5 + $0x18] sm:$0xff]  ;;  %s81_s1 = sshll.u32 %s182_s0, 4  ;;  %s83_s23 = sshll.u32 %s209_s2, 4  ;;  %s82_s1 = int_to_ptr.vmem [resolvable:$true] %s81_s1  ;;  %s84_s23 = int_to_ptr.hbm [resolvable:$true] %s83_s23 }
   0xd   :  { %v45_v5 = vld [vmem:[#allocation5 + $0x10] sm:$0xff]  ;;  %v44_v6 = vld [vmem:[#allocation5 + $0x8] sm:$0xff]  ;;  %v43_v7 = vld [vmem:[#allocation5] sm:$0xff] }
   0xe   :  { %64 = vmatpush.msra.mxu0 %v49_v1  ;;  %v42_v8 = vld [vmem:[#allocation2] sm:$0xff] }
  0x10   :  { %65 = vmatpush.msra.mxu0 %v48_v2 }
  0x12   :  { %66 = vmatpush.msra.mxu0 %v47_v3 }
  0x14   :  { %67 = vmatpush.msra.mxu0 %v46_v4 }
  0x16   :  { %68 = vmatpush.msra.mxu0 %v45_v5 }
  0x18   :  { %69 = vmatpush.msra.mxu0 %v44_v6 }
  0x1a   :  { %70 = vmatpush.msra.mxu0 %v43_v7 }
  0x1b   :  { %94 = vmatmul.msk.f32.vlgmr.msra.gmra.mxu0 %vm51_vm0, %v42_v8 }
  0x98   :  { %v72_v9 = vpop.f32.mrf.mxu0 }
  0x99   :  { %75 = vst [vmem:[#allocation7] sm:$0xff] %v72_v9 }
  0x9a   :  { %86 = dma.vmem_to_hbm [thread:$0]  %s82_s1, 128, %s84_s23, [#allocation4]  }
  0x9b   :  { %176 = dma.done.wait [#allocation4], 128  }
  0x9c   :  { %177 = vsyncadd [#allocation4], 4294967168 }
  0x9d   :  { %91 = vsyncpa [#allocation3], 1 }
  0x9e   :  { %92 = vsyncpa [#allocation6], 1 }
  0x9f   :  { %93 = vsyncpa [#allocation4], 1 }

</bundles_post_ra>
